<compile_context>
chip_gen: v5e
topology: v5e:2x2
jax: 0.10.0
libtpu: 0.0.40
codegen_flags: <defaults>
</compile_context>

<pallas_src>
import jax
import jax.numpy as jnp
from jax.experimental import pallas as pl
from jax.experimental.pallas import tpu as pltpu

HID1, HID2, HID3 = 256, 256, 128
TB_MAX = 1024          # per-grid-step batch tile upper bound (multiple of 256)
SUB_TILES = 2          # statically-unrolled half-tiles inside one grid step


def _round_up(x, m):
    return (x + m - 1) // m * m


def _num_tensorcores():
    """Best effort: v7x exposes 2 TensorCores per chip, older gens 1."""
    try:
        kind = jax.devices()[0].device_kind.lower()
    except Exception:
        kind = ""
    return 2 if "v7" in kind else 1


def _tile_batch(batch):
    """Pick (tb, b_total, n_tiles): tb <= TB_MAX, a multiple of 16 (so it
    splits into two sublane-aligned half-tiles), dividing the padded batch
    tightly; on 2-core parts keep the grid >= 2 steps when the batch allows."""
    b16 = _round_up(max(batch, 1), 2 * 8)
    n_tiles = pl.cdiv(b16, TB_MAX)
    if _num_tensorcores() >= 2 and b16 >= 2 * 16:
        n_tiles = max(n_tiles, 2)                      # feed both TensorCores
    tb = _round_up(pl.cdiv(b16, n_tiles), 2 * 8)
    return tb, n_tiles * tb, n_tiles


def dqn_kernel(x_ref, w1_ref, w2_ref, w3_ref, w4_ref,
               b1_ref, b2_ref, b3_ref, b4_ref, o_ref):
    tb = x_ref.shape[0]
    half = tb // SUB_TILES

    w1, w2, w3, w4 = w1_ref[...], w2_ref[...], w3_ref[...], w4_ref[...]
    b1, b2, b3, b4 = b1_ref[...], b2_ref[...], b3_ref[...], b4_ref[...]

    # Two independent half-tile chains (static unroll): the scheduler can
    # overlap one half's MXU matmuls with the other half's VPU epilogue.
    for s in range(SUB_TILES):
        rows = slice(s * half, (s + 1) * half)                 # static slice
        h = x_ref[rows, :].astype(jnp.bfloat16)                # cast in-kernel
        h = jnp.dot(h, w1, preferred_element_type=jnp.float32)
        h = jnp.maximum(h + b1, 0.0).astype(jnp.bfloat16)
        h = jnp.dot(h, w2, preferred_element_type=jnp.float32)
        h = jnp.maximum(h + b2, 0.0).astype(jnp.bfloat16)
        h = jnp.dot(h, w3, preferred_element_type=jnp.float32)
        h = jnp.maximum(h + b3, 0.0).astype(jnp.bfloat16)
        h = jnp.dot(h, w4, preferred_element_type=jnp.float32)
        o_ref[rows, :] = (h + b4).astype(o_ref.dtype)


def prepare_params(params):
    """f32 params ([in,out] weights, [1,out] biases) -> bf16 weights, f32
    biases.  In a real RL loop this runs once per parameter update."""
    return [(w.astype(jnp.bfloat16), b.astype(jnp.float32)) for w, b in params]


def dqn_forward(x, params):
    B, S = x.shape
    A = params[3][0].shape[1]
    (w1, b1), (w2, b2), (w3, b3), (w4, b4) = prepare_params(params)

    tb, b_total, n_tiles = _tile_batch(B)

    # Only the batch axis gets zero-padded (to a tile multiple); the feature
    # axis stays at S and the cast happens in-kernel, so there is no extra
    # wrapper-side pad/cast pass over the activations.
    if b_total != B:
        xp = jnp.zeros((b_total, S), x.dtype).at[:B, :].set(x)
    else:
        xp = x

    resident = lambda i: (0, 0)     # stays in VMEM across the whole grid

    # TODO(synk): if xprof on v5e still shows exposed x/out DMA at this tile
    # size, add pipeline_mode=pl.Buffered(3) to the x / out BlockSpecs.
    out = pl.pallas_call(
        dqn_kernel,
        out_shape=jax.ShapeDtypeStruct((b_total, A), jnp.float32),
        grid=(n_tiles,),
        in_specs=[
            pl.BlockSpec((tb, S), lambda i: (i, 0)),   # x tile, unpadded cols
            pl.BlockSpec((S, HID1), resident),         # W1
            pl.BlockSpec((HID1, HID2), resident),      # W2
            pl.BlockSpec((HID2, HID3), resident),      # W3
            pl.BlockSpec((HID3, A), resident),         # W4 (real action cols)
            pl.BlockSpec((1, HID1), resident),         # b1
            pl.BlockSpec((1, HID2), resident),         # b2
            pl.BlockSpec((1, HID3), resident),         # b3
            pl.BlockSpec((1, A), resident),            # b4
        ],
        out_specs=pl.BlockSpec((tb, A), lambda i: (i, 0)),
        compiler_params=pltpu.CompilerParams(
            dimension_semantics=("parallel",)),        # megacore on v7x
    )(xp, w1, w2, w3, w4, b1, b2, b3, b4)

    return out[:B, :]


def init_linear(key, fan_in, fan_out):
    """PyTorch-style default Linear init: U(-1/sqrt(fan_in), 1/sqrt(fan_in))."""
    kw, kb = jax.random.split(key)
    bound = 1.0 / jnp.sqrt(jnp.float32(fan_in))
    w = jax.random.uniform(kw, (fan_in, fan_out), jnp.float32, -bound, bound)
    b = jax.random.uniform(kb, (1, fan_out), jnp.float32, -bound, bound)
    return w, b


def dqn_reference_f32(x, params):
    """Exact PyTorch-semantics (f32) reference."""
    h = x
    for i, (w, b) in enumerate(params):
        h = h @ w + b
        if i < len(params) - 1:
            h = jnp.maximum(h, 0.0)
    return h


def dqn_reference_bf16(x, params):
    """Mirror of the kernel numerics: bf16 weights/activations, f32 accumulate."""
    h = x.astype(jnp.bfloat16)
    for i, (w, b) in enumerate(params):
        h = jnp.dot(h, w.astype(jnp.bfloat16),
                    preferred_element_type=jnp.float32) + b
        if i < len(params) - 1:
            h = jnp.maximum(h, 0.0).astype(jnp.bfloat16)
    return h


if __name__ == "__main__":
    state_dim, action_dim, batch = 16, 8, 2

    key = jax.random.PRNGKey(0)
    k_x, k1, k2, k3, k4 = jax.random.split(key, 5)

    params = [
        init_linear(k1, state_dim, 256),
        init_linear(k2, 256, 256),
        init_linear(k3, 256, 128),
        init_linear(k4, 128, action_dim),
    ]

    x = jax.random.normal(k_x, (batch, state_dim), jnp.float32)

    out = jax.jit(dqn_forward)(x, params)
    out = jax.block_until_ready(out)
    assert out.shape == (batch, action_dim)

    # Tight check against a reference that mirrors the kernel's bf16/f32 numerics.
    ref_mirror = dqn_reference_bf16(x, params)
    assert jnp.allclose(out, ref_mirror, atol=1e-3, rtol=1e-3), "mismatch vs bf16 mirror"

    # Loose sanity check against the exact f32 PyTorch-semantics reference.
    ref_f32 = dqn_reference_f32(x, params)
    assert jnp.allclose(out, ref_f32, atol=5e-2, rtol=5e-2), "mismatch vs f32 reference"

    print("KERNEL_OK")
</pallas_src>

<mosaic_0001>
module attributes {stable_mosaic.version = 11 : i64} {
  func.func @dqn_kernel(%arg0: i32, %arg1: memref<16x16xf32, #tpu.memory_space<vmem>>, %arg2: memref<16x256xbf16, #tpu.memory_space<vmem>>, %arg3: memref<256x256xbf16, #tpu.memory_space<vmem>>, %arg4: memref<256x128xbf16, #tpu.memory_space<vmem>>, %arg5: memref<128x8xbf16, #tpu.memory_space<vmem>>, %arg6: memref<1x256xf32, #tpu.memory_space<vmem>>, %arg7: memref<1x256xf32, #tpu.memory_space<vmem>>, %arg8: memref<1x128xf32, #tpu.memory_space<vmem>>, %arg9: memref<1x8xf32, #tpu.memory_space<vmem>>, %arg10: memref<16x8xf32, #tpu.memory_space<vmem>>) attributes {dimension_semantics = [#tpu.dimension_semantics<parallel>], iteration_bounds = array<i64: 1>, scalar_prefetch = 0 : i64, scratch_operands = 0 : i64, tpu.core_type = #tpu.core_type<tc>, window_params = [{transform_indices = @transform_0, window_bounds = array<i64: 16, 16>}, {pipeline_mode = #tpu.pipeline_mode<synchronous>, transform_indices = @transform_1, window_bounds = array<i64: 16, 256>}, {pipeline_mode = #tpu.pipeline_mode<synchronous>, transform_indices = @transform_2, window_bounds = array<i64: 256, 256>}, {pipeline_mode = #tpu.pipeline_mode<synchronous>, transform_indices = @transform_3, window_bounds = array<i64: 256, 128>}, {pipeline_mode = #tpu.pipeline_mode<synchronous>, transform_indices = @transform_4, window_bounds = array<i64: 128, 8>}, {pipeline_mode = #tpu.pipeline_mode<synchronous>, transform_indices = @transform_5, window_bounds = array<i64: 1, 256>}, {pipeline_mode = #tpu.pipeline_mode<synchronous>, transform_indices = @transform_6, window_bounds = array<i64: 1, 256>}, {pipeline_mode = #tpu.pipeline_mode<synchronous>, transform_indices = @transform_7, window_bounds = array<i64: 1, 128>}, {pipeline_mode = #tpu.pipeline_mode<synchronous>, transform_indices = @transform_8, window_bounds = array<i64: 1, 8>}, {transform_indices = @transform_9, window_bounds = array<i64: 16, 8>}]} {
    %c0 = arith.constant 0 : index
    %c0_0 = arith.constant 0 : index
    %0 = vector.load %arg2[%c0, %c0_0] : memref<16x256xbf16, #tpu.memory_space<vmem>>, vector<16x256xbf16>
    %c0_1 = arith.constant 0 : index
    %c0_2 = arith.constant 0 : index
    %1 = vector.load %arg3[%c0_1, %c0_2] : memref<256x256xbf16, #tpu.memory_space<vmem>>, vector<256x256xbf16>
    %c0_3 = arith.constant 0 : index
    %c0_4 = arith.constant 0 : index
    %2 = vector.load %arg4[%c0_3, %c0_4] : memref<256x128xbf16, #tpu.memory_space<vmem>>, vector<256x128xbf16>
    %c0_5 = arith.constant 0 : index
    %c0_6 = arith.constant 0 : index
    %3 = vector.load %arg5[%c0_5, %c0_6] : memref<128x8xbf16, #tpu.memory_space<vmem>>, vector<128x8xbf16>
    %c0_7 = arith.constant 0 : index
    %c0_8 = arith.constant 0 : index
    %4 = vector.load %arg6[%c0_7, %c0_8] : memref<1x256xf32, #tpu.memory_space<vmem>>, vector<1x256xf32>
    %c0_9 = arith.constant 0 : index
    %c0_10 = arith.constant 0 : index
    %5 = vector.load %arg7[%c0_9, %c0_10] : memref<1x256xf32, #tpu.memory_space<vmem>>, vector<1x256xf32>
    %c0_11 = arith.constant 0 : index
    %c0_12 = arith.constant 0 : index
    %6 = vector.load %arg8[%c0_11, %c0_12] : memref<1x128xf32, #tpu.memory_space<vmem>>, vector<1x128xf32>
    %c0_13 = arith.constant 0 : index
    %c0_14 = arith.constant 0 : index
    %7 = vector.load %arg9[%c0_13, %c0_14] : memref<1x8xf32, #tpu.memory_space<vmem>>, vector<1x8xf32>
    %c0_15 = arith.constant 0 : index
    %c0_16 = arith.constant 0 : index
    %8 = vector.load %arg1[%c0_15, %c0_16] : memref<16x16xf32, #tpu.memory_space<vmem>>, vector<8x16xf32>
    %9 = arith.truncf %8 : vector<8x16xf32> to vector<8x16xbf16>
    %cst = arith.constant dense<0.000000e+00> : vector<8x256xf32>
    %10 = tpu.matmul %9, %0, %cst {dimension_numbers = #tpu.dot_dimension_numbers<[1], [0], [0], [1], [0, 0, 1, 1], [], []>} : vector<8x16xbf16>, vector<16x256xbf16>, vector<8x256xf32> -> vector<8x256xf32>
    %11 = vector.broadcast %4 : vector<1x256xf32> to vector<8x256xf32>
    %12 = arith.addf %10, %11 : vector<8x256xf32>
    %cst_17 = arith.constant 0.000000e+00 : f32
    %13 = vector.broadcast %cst_17 : f32 to vector<8x256xf32>
    %14 = arith.maximumf %12, %13 : vector<8x256xf32>
    %15 = arith.truncf %14 : vector<8x256xf32> to vector<8x256xbf16>
    %cst_18 = arith.constant dense<0.000000e+00> : vector<8x256xf32>
    %16 = tpu.matmul %15, %1, %cst_18 {dimension_numbers = #tpu.dot_dimension_numbers<[1], [0], [0], [1], [0, 0, 1, 1], [], []>} : vector<8x256xbf16>, vector<256x256xbf16>, vector<8x256xf32> -> vector<8x256xf32>
    %17 = vector.broadcast %5 : vector<1x256xf32> to vector<8x256xf32>
    %18 = arith.addf %16, %17 : vector<8x256xf32>
    %cst_19 = arith.constant 0.000000e+00 : f32
    %19 = vector.broadcast %cst_19 : f32 to vector<8x256xf32>
    %20 = arith.maximumf %18, %19 : vector<8x256xf32>
    %21 = arith.truncf %20 : vector<8x256xf32> to vector<8x256xbf16>
    %cst_20 = arith.constant dense<0.000000e+00> : vector<8x128xf32>
    %22 = tpu.matmul %21, %2, %cst_20 {dimension_numbers = #tpu.dot_dimension_numbers<[1], [0], [0], [1], [0, 0, 1, 1], [], []>} : vector<8x256xbf16>, vector<256x128xbf16>, vector<8x128xf32> -> vector<8x128xf32>
    %23 = vector.broadcast %6 : vector<1x128xf32> to vector<8x128xf32>
    %24 = arith.addf %22, %23 : vector<8x128xf32>
    %cst_21 = arith.constant 0.000000e+00 : f32
    %25 = vector.broadcast %cst_21 : f32 to vector<8x128xf32>
    %26 = arith.maximumf %24, %25 : vector<8x128xf32>
    %27 = arith.truncf %26 : vector<8x128xf32> to vector<8x128xbf16>
    %cst_22 = arith.constant dense<0.000000e+00> : vector<8x8xf32>
    %28 = tpu.matmul %27, %3, %cst_22 {dimension_numbers = #tpu.dot_dimension_numbers<[1], [0], [0], [1], [0, 0, 1, 1], [], []>} : vector<8x128xbf16>, vector<128x8xbf16>, vector<8x8xf32> -> vector<8x8xf32>
    %29 = vector.broadcast %7 : vector<1x8xf32> to vector<8x8xf32>
    %30 = arith.addf %28, %29 : vector<8x8xf32>
    %c0_23 = arith.constant 0 : index
    %c0_24 = arith.constant 0 : index
    %31 = vector.load %arg10[%c0_23, %c0_24] : memref<16x8xf32, #tpu.memory_space<vmem>>, vector<8x8xf32>
    tpu.vector_store %arg10[%c0_23, %c0_24], %30 {strides = array<i32>} : memref<16x8xf32, #tpu.memory_space<vmem>>, vector<8x8xf32>,
    %c8 = arith.constant 8 : index
    %c0_25 = arith.constant 0 : index
    %32 = vector.load %arg1[%c8, %c0_25] : memref<16x16xf32, #tpu.memory_space<vmem>>, vector<8x16xf32>
    %33 = arith.truncf %32 : vector<8x16xf32> to vector<8x16xbf16>
    %cst_26 = arith.constant dense<0.000000e+00> : vector<8x256xf32>
    %34 = tpu.matmul %33, %0, %cst_26 {dimension_numbers = #tpu.dot_dimension_numbers<[1], [0], [0], [1], [0, 0, 1, 1], [], []>} : vector<8x16xbf16>, vector<16x256xbf16>, vector<8x256xf32> -> vector<8x256xf32>
    %35 = vector.broadcast %4 : vector<1x256xf32> to vector<8x256xf32>
    %36 = arith.addf %34, %35 : vector<8x256xf32>
    %cst_27 = arith.constant 0.000000e+00 : f32
    %37 = vector.broadcast %cst_27 : f32 to vector<8x256xf32>
    %38 = arith.maximumf %36, %37 : vector<8x256xf32>
    %39 = arith.truncf %38 : vector<8x256xf32> to vector<8x256xbf16>
    %cst_28 = arith.constant dense<0.000000e+00> : vector<8x256xf32>
    %40 = tpu.matmul %39, %1, %cst_28 {dimension_numbers = #tpu.dot_dimension_numbers<[1], [0], [0], [1], [0, 0, 1, 1], [], []>} : vector<8x256xbf16>, vector<256x256xbf16>, vector<8x256xf32> -> vector<8x256xf32>
    %41 = vector.broadcast %5 : vector<1x256xf32> to vector<8x256xf32>
    %42 = arith.addf %40, %41 : vector<8x256xf32>
    %cst_29 = arith.constant 0.000000e+00 : f32
    %43 = vector.broadcast %cst_29 : f32 to vector<8x256xf32>
    %44 = arith.maximumf %42, %43 : vector<8x256xf32>
    %45 = arith.truncf %44 : vector<8x256xf32> to vector<8x256xbf16>
    %cst_30 = arith.constant dense<0.000000e+00> : vector<8x128xf32>
    %46 = tpu.matmul %45, %2, %cst_30 {dimension_numbers = #tpu.dot_dimension_numbers<[1], [0], [0], [1], [0, 0, 1, 1], [], []>} : vector<8x256xbf16>, vector<256x128xbf16>, vector<8x128xf32> -> vector<8x128xf32>
    %47 = vector.broadcast %6 : vector<1x128xf32> to vector<8x128xf32>
    %48 = arith.addf %46, %47 : vector<8x128xf32>
    %cst_31 = arith.constant 0.000000e+00 : f32
    %49 = vector.broadcast %cst_31 : f32 to vector<8x128xf32>
    %50 = arith.maximumf %48, %49 : vector<8x128xf32>
    %51 = arith.truncf %50 : vector<8x128xf32> to vector<8x128xbf16>
    %cst_32 = arith.constant dense<0.000000e+00> : vector<8x8xf32>
    %52 = tpu.matmul %51, %3, %cst_32 {dimension_numbers = #tpu.dot_dimension_numbers<[1], [0], [0], [1], [0, 0, 1, 1], [], []>} : vector<8x128xbf16>, vector<128x8xbf16>, vector<8x8xf32> -> vector<8x8xf32>
    %53 = vector.broadcast %7 : vector<1x8xf32> to vector<8x8xf32>
    %54 = arith.addf %52, %53 : vector<8x8xf32>
    %c8_33 = arith.constant 8 : index
    %c0_34 = arith.constant 0 : index
    %55 = vector.load %arg10[%c8_33, %c0_34] : memref<16x8xf32, #tpu.memory_space<vmem>>, vector<8x8xf32>
    tpu.vector_store %arg10[%c8_33, %c0_34], %54 {strides = array<i32>} : memref<16x8xf32, #tpu.memory_space<vmem>>, vector<8x8xf32>,
    return
  }
  func.func @transform_0(%arg0: i32) -> (i32, i32) {
    %c0_i32 = arith.constant 0 : i32
    %c0_i32_0 = arith.constant 0 : i32
    return %arg0, %c0_i32 : i32, i32
  }
  func.func @transform_1(%arg0: i32) -> (i32, i32) {
    %c0_i32 = arith.constant 0 : i32
    %c0_i32_0 = arith.constant 0 : i32
    %c0_i32_1 = arith.constant 0 : i32
    return %c0_i32, %c0_i32_0 : i32, i32
  }
  func.func @transform_2(%arg0: i32) -> (i32, i32) {
    %c0_i32 = arith.constant 0 : i32
    %c0_i32_0 = arith.constant 0 : i32
    %c0_i32_1 = arith.constant 0 : i32
    return %c0_i32, %c0_i32_0 : i32, i32
  }
  func.func @transform_3(%arg0: i32) -> (i32, i32) {
    %c0_i32 = arith.constant 0 : i32
    %c0_i32_0 = arith.constant 0 : i32
    %c0_i32_1 = arith.constant 0 : i32
    return %c0_i32, %c0_i32_0 : i32, i32
  }
  func.func @transform_4(%arg0: i32) -> (i32, i32) {
    %c0_i32 = arith.constant 0 : i32
    %c0_i32_0 = arith.constant 0 : i32
    %c0_i32_1 = arith.constant 0 : i32
    return %c0_i32, %c0_i32_0 : i32, i32
  }
  func.func @transform_5(%arg0: i32) -> (i32, i32) {
    %c0_i32 = arith.constant 0 : i32
    %c0_i32_0 = arith.constant 0 : i32
    %c0_i32_1 = arith.constant 0 : i32
    return %c0_i32, %c0_i32_0 : i32, i32
  }
  func.func @transform_6(%arg0: i32) -> (i32, i32) {
    %c0_i32 = arith.constant 0 : i32
    %c0_i32_0 = arith.constant 0 : i32
    %c0_i32_1 = arith.constant 0 : i32
    return %c0_i32, %c0_i32_0 : i32, i32
  }
  func.func @transform_7(%arg0: i32) -> (i32, i32) {
    %c0_i32 = arith.constant 0 : i32
    %c0_i32_0 = arith.constant 0 : i32
    %c0_i32_1 = arith.constant 0 : i32
    return %c0_i32, %c0_i32_0 : i32, i32
  }
  func.func @transform_8(%arg0: i32) -> (i32, i32) {
    %c0_i32 = arith.constant 0 : i32
    %c0_i32_0 = arith.constant 0 : i32
    %c0_i32_1 = arith.constant 0 : i32
    return %c0_i32, %c0_i32_0 : i32, i32
  }
  func.func @transform_9(%arg0: i32) -> (i32, i32) {
    %c0_i32 = arith.constant 0 : i32
    %c0_i32_0 = arith.constant 0 : i32
    return %arg0, %c0_i32 : i32, i32
  }
}

</mosaic_0001>

<bundles_post_ra>
// kernel: dqn_forward.1
= control target key start
LH: loop header
LB: loop body
LE: loop exit
PB: predicated region body
PF: predicated region fallthrough
CT: control target
= control target key end

     0   :  { %vm136_vm0 = vcmask 130048   ;;  %vm582_vm1 = vcmask 64512   ;;  %s1617_s1 = inlined_call_operand.vmem [shape: bf16[16,256], index: 1, kind: input, shape index: {}]   ;;  %s1618_s0 = inlined_call_operand.vmem [shape: f32[16,16], index: 0, kind: input, shape index: {}]   ;;  %s1619_s2 = inlined_call_operand.vmem [shape: bf16[256,256], index: 2, kind: input, shape index: {}]   ;;  %s1620_s3 = inlined_call_operand.vmem [shape: bf16[256,128], index: 3, kind: input, shape index: {}]   ;;  %s1621_s5 = inlined_call_operand.vmem [shape: f32[1,256], index: 5, kind: input, shape index: {}]   ;;  %s1622_s4 = inlined_call_operand.vmem [shape: bf16[128,8], index: 4, kind: input, shape index: {}]   ;;  %s1623_s6 = inlined_call_operand.vmem [shape: f32[1,256], index: 6, kind: input, shape index: {}]   ;;  %s1624_s7 = inlined_call_operand.vmem [shape: f32[1,128], index: 7, kind: input, shape index: {}]   ;;  %s1625_s8 = inlined_call_operand.vmem [shape: f32[1,8], index: 8, kind: input, shape index: {}]   ;;  %s1626_s9 = inlined_call_operand.vmem [shape: f32[16,8], index: 9, kind: output, shape index: {}]  }
   0x1   :  { %v723_v0 = vld [vmem:[%s1617_s1] sm:$0xf]  ;;  %v958_v1 = vld [vmem:[%s1617_s1 + $0x4] sm:$0xf0]  ;;  %v957_v4 = vld [vmem:[%s1617_s1 + $0x4] sm:$0xf] }
   0x2   :  { %v119_v2 = vld [vmem:[%s1618_s0] sm:$0xff]  ;;  %v1076_v3 = vor.u32 %v958_v1, %v723_v0  ;;  %v725_v5 = vld [vmem:[%s1617_s1 + $0x8] sm:$0xf0]  ;;  %v789_v8 = vld [vmem:[%s1619_s2 + $0x70] sm:$0xf] }
   0x3   :  { %v1084_v6 = vpack.c.bf16 %v119_v2, %v119_v2  ;;  %v1086_v7 = vor.u32 %v957_v4, %v725_v5  ;;  %v974_v9 = vld [vmem:[%s1619_s2 + $0x74] sm:$0xf0]  ;;  %v973_v10 = vld [vmem:[%s1619_s2 + $0x74] sm:$0xf]  ;;  %v791_v12 = vld [vmem:[%s1619_s2 + $0x78] sm:$0xf0] }
   0x4   :  { %147 = vmatpush.bf16.msra.mxu1 %v1076_v3  ;;  %v1098_v11 = vor.u32 %v974_v9, %v789_v8  ;;  %v781_v13 = vld [vmem:[%s1619_s2 + $0x60] sm:$0xf]  ;;  %v972_v14 = vld [vmem:[%s1619_s2 + $0x64] sm:$0xf0]  ;;  %v1110_v15 = vor.u32 %v973_v10, %v791_v12  ;;  %v971_v16 = vld [vmem:[%s1619_s2 + $0x64] sm:$0xf] }
   0x5   :  { %v783_v17 = vld [vmem:[%s1619_s2 + $0x68] sm:$0xf0]  ;;  %v1119_v18 = vor.u32 %v972_v14, %v781_v13  ;;  %v773_v20 = vld [vmem:[%s1619_s2 + $0x50] sm:$0xf]  ;;  %v970_v21 = vld [vmem:[%s1619_s2 + $0x54] sm:$0xf0] }
   0x6   :  { %335 = vmatpush.bf16.msra.mxu2 %v1098_v11  ;;  %361 = vmatpush.bf16.msra.mxu0 %v1110_v15  ;;  %v1124_v19 = vor.u32 %v971_v16, %v783_v17  ;;  %v969_v22 = vld [vmem:[%s1619_s2 + $0x54] sm:$0xf]  ;;  %v775_v23 = vld [vmem:[%s1619_s2 + $0x58] sm:$0xf0]  ;;  %v853_v24 = vld [vmem:[%s1619_s2 + $0xf0] sm:$0xf]  ;;  %v1145_v26 = vor.u32 %v970_v21, %v773_v20 }
   0x7   :  { %729 = vmatmul.msk.bf16.vlgmr.msra.gmra.mxu1 %vm136_vm0, %v1084_v6  ;;  %v990_v25 = vld [vmem:[%s1619_s2 + $0xf4] sm:$0xf0]  ;;  %v989_v28 = vld [vmem:[%s1619_s2 + $0xf4] sm:$0xf]  ;;  %v855_v29 = vld [vmem:[%s1619_s2 + $0xf8] sm:$0xf0]  ;;  %v1156_v30 = vor.u32 %v969_v22, %v775_v23 }
   0x8   :  { %160 = vmatpush.bf16.msrb.mxu1 %v1086_v7  ;;  %v1147_v27 = vor.u32 %v990_v25, %v853_v24  ;;  %v765_v31 = vld [vmem:[%s1619_s2 + $0x40] sm:$0xf]  ;;  %v968_v32 = vld [vmem:[%s1619_s2 + $0x44] sm:$0xf0]  ;;  %v1164_v33 = vor.u32 %v989_v28, %v855_v29  ;;  %v967_v35 = vld [vmem:[%s1619_s2 + $0x44] sm:$0xf] }
   0x9   :  { %v845_v34 = vld [vmem:[%s1619_s2 + $0xe0] sm:$0xf]  ;;  %v767_v36 = vld [vmem:[%s1619_s2 + $0x48] sm:$0xf0]  ;;  %v988_v37 = vld [vmem:[%s1619_s2 + $0xe4] sm:$0xf0]  ;;  %v1189_v41 = vor.u32 %v968_v32, %v765_v31 }
   0xa   :  { %336 = vmatpush.bf16.msra.mxu2 %v1119_v18  ;;  %362 = vmatpush.bf16.msra.mxu0 %v1124_v19  ;;  %v1180_v38 = vor.u32 %v988_v37, %v845_v34  ;;  %v987_v39 = vld [vmem:[%s1619_s2 + $0xe4] sm:$0xf]  ;;  %v847_v40 = vld [vmem:[%s1619_s2 + $0xe8] sm:$0xf0]  ;;  %v1194_v43 = vor.u32 %v967_v35, %v767_v36  ;;  %v757_v44 = vld [vmem:[%s1619_s2 + $0x30] sm:$0xf] }
   0xb   :  { %348 = vmatpush.bf16.msra.mxu3 %v1147_v27  ;;  %v1191_v42 = vor.u32 %v987_v39, %v847_v40  ;;  %v966_v45 = vld [vmem:[%s1619_s2 + $0x34] sm:$0xf0]  ;;  %v965_v46 = vld [vmem:[%s1619_s2 + $0x34] sm:$0xf]  ;;  %v759_v47 = vld [vmem:[%s1619_s2 + $0x38] sm:$0xf0] }
   0xc   :  { %374 = vmatpush.bf16.msra.mxu1 %v1164_v33  ;;  %v1211_v48 = vor.u32 %v966_v45, %v757_v44  ;;  %v1214_v49 = vor.u32 %v965_v46, %v759_v47  ;;  %v749_v50 = vld [vmem:[%s1619_s2 + $0x20] sm:$0xf]  ;;  %v964_v51 = vld [vmem:[%s1619_s2 + $0x24] sm:$0xf0]  ;;  %v963_v52 = vld [vmem:[%s1619_s2 + $0x24] sm:$0xf] }
   0xd   :  { %v751_v53 = vld [vmem:[%s1619_s2 + $0x28] sm:$0xf0]  ;;  %v1229_v54 = vor.u32 %v964_v51, %v749_v50  ;;  %v741_v56 = vld [vmem:[%s1619_s2 + $0x10] sm:$0xf]  ;;  %v962_v57 = vld [vmem:[%s1619_s2 + $0x14] sm:$0xf0] }
   0xe   :  { %337 = vmatpush.bf16.msra.mxu2 %v1145_v26  ;;  %363 = vmatpush.bf16.msra.mxu0 %v1156_v30  ;;  %v1234_v55 = vor.u32 %v963_v52, %v751_v53  ;;  %v837_v58 = vld [vmem:[%s1619_s2 + $0xd0] sm:$0xf]  ;;  %v1247_v59 = vor.u32 %v962_v57, %v741_v56  ;;  %v986_v60 = vld [vmem:[%s1619_s2 + $0xd4] sm:$0xf0]  ;;  %v961_v61 = vld [vmem:[%s1619_s2 + $0x14] sm:$0xf] }
   0xf   :  { %349 = vmatpush.bf16.msra.mxu3 %v1180_v38  ;;  %v743_v62 = vld [vmem:[%s1619_s2 + $0x18] sm:$0xf0]  ;;  %v1258_v63 = vor.u32 %v986_v60, %v837_v58  ;;  %v985_v1 = vld [vmem:[%s1619_s2 + $0xd4] sm:$0xf]  ;;  %v733_v5 = vld [vmem:[%s1619_s2] sm:$0xf] }
  0x10   :  { %375 = vmatpush.bf16.msra.mxu1 %v1191_v42  ;;  %v1260_v0 = vor.u32 %v961_v61, %v743_v62  ;;  %v839_v2 = vld [vmem:[%s1619_s2 + $0xd8] sm:$0xf0]  ;;  %v829_v8 = vld [vmem:[%s1619_s2 + $0xc0] sm:$0xf]  ;;  %v984_v10 = vld [vmem:[%s1619_s2 + $0xc4] sm:$0xf0] }
  0x11   :  { %v1269_v4 = vor.u32 %v985_v1, %v839_v2  ;;  %v959_v12 = vld [vmem:[%s1619_s2 + $0x4] sm:$0xf]  ;;  %v735_v13 = vld [vmem:[%s1619_s2 + $0x8] sm:$0xf0]  ;;  %v1294_v14 = vor.u32 %v984_v10, %v829_v8  ;;  %v821_v22 = vld [vmem:[%s1619_s2 + $0xb0] sm:$0xf] }
  0x12   :  { %338 = vmatpush.bf16.msra.mxu2 %v1189_v41  ;;  %364 = vmatpush.bf16.msra.mxu0 %v1194_v43  ;;  %v1296_v16 = vor.u32 %v959_v12, %v735_v13  ;;  %v983_v17 = vld [vmem:[%s1619_s2 + $0xc4] sm:$0xf]  ;;  %v831_v20 = vld [vmem:[%s1619_s2 + $0xc8] sm:$0xf0]  ;;  %v982_v23 = vld [vmem:[%s1619_s2 + $0xb4] sm:$0xf0] }
  0x13   :  { %350 = vmatpush.bf16.msra.mxu3 %v1258_v63  ;;  %v1305_v21 = vor.u32 %v983_v17, %v831_v20  ;;  %v981_v24 = vld [vmem:[%s1619_s2 + $0xb4] sm:$0xf]  ;;  %v1319_v25 = vor.u32 %v982_v23, %v821_v22  ;;  %v823_v28 = vld [vmem:[%s1619_s2 + $0xb8] sm:$0xf0]  ;;  %v813_v31 = vld [vmem:[%s1619_s2 + $0xa0] sm:$0xf] }
  0x14   :  { %376 = vmatpush.bf16.msra.mxu1 %v1269_v4  ;;  %v826_v29 = vor.u32 %v981_v24, %v823_v28  ;;  %v980_v32 = vld [vmem:[%s1619_s2 + $0xa4] sm:$0xf0]  ;;  %v979_v34 = vld [vmem:[%s1619_s2 + $0xa4] sm:$0xf]  ;;  %v815_v36 = vld [vmem:[%s1619_s2 + $0xa8] sm:$0xf0] }
  0x15   :  { %v1334_v35 = vor.u32 %v980_v32, %v813_v31  ;;  %v818_v37 = vor.u32 %v979_v34, %v815_v36  ;;  %v805_v39 = vld [vmem:[%s1619_s2 + $0x90] sm:$0xf]  ;;  %v978_v40 = vld [vmem:[%s1619_s2 + $0x94] sm:$0xf0]  ;;  %v977_v44 = vld [vmem:[%s1619_s2 + $0x94] sm:$0xf] }
  0x16   :  { %339 = vmatpush.bf16.msra.mxu2 %v1211_v48  ;;  %365 = vmatpush.bf16.msra.mxu0 %v1214_v49  ;;  %v1349_v45 = vor.u32 %v978_v40, %v805_v39  ;;  %v807_v46 = vld [vmem:[%s1619_s2 + $0x98] sm:$0xf0]  ;;  %v797_v50 = vld [vmem:[%s1619_s2 + $0x80] sm:$0xf]  ;;  %v976_v51 = vld [vmem:[%s1619_s2 + $0x84] sm:$0xf0] }
  0x17   :  { %730 = vmatmul.msk.bf16.vlgmr.msrb.gmra.mxu1 %vm136_vm0, %v1084_v6  ;;  %v960_v6 = vld [vmem:[%s1619_s2 + $0x4] sm:$0xf0]  ;;  %351 = vmatpush.bf16.msra.mxu3 %v1294_v14  ;;  %v810_v47 = vor.u32 %v977_v44, %v807_v46  ;;  %v975_v52 = vld [vmem:[%s1619_s2 + $0x84] sm:$0xf]  ;;  %v1364_v53 = vor.u32 %v976_v51, %v797_v50  ;;  %v799_v56 = vld [vmem:[%s1619_s2 + $0x88] sm:$0xf0] }
  0x18   :  { %v1283_v9 = vor.u32 %v960_v6, %v733_v5  ;;  %377 = vmatpush.bf16.msra.mxu1 %v1305_v21  ;;  %v802_v57 = vor.u32 %v975_v52, %v799_v56  ;;  %v1374_v58 = vld [vmem:[%s1620_s3 + $0x78] sm:$0xff]  ;;  %v1384_v61 = vld [vmem:[%s1621_s5] sm:$0x3]  ;;  %v584_v23 = vld [vmem:[%s1618_s0 + $0x8] sm:$0xff] }
  0x19   :  { %v1379_v60 = vld [vmem:[%s1620_s3 + $0x38] sm:$0xff]  ;;  %v122_v62 = vperm.slane %v1384_v61, 0  ;;  %v123_v10 = vperm.slane %v1384_v61, 1  ;;  %v585_v24 = vpack.c.bf16 %v584_v23, %v584_v23  ;;  %v1443_v28 = vld [vmem:[%s1620_s3 + $0x20] sm:$0xff]  ;;  %v1461_v32 = vld [vmem:[%s1620_s3 + $0x48] sm:$0xff] }
  0x1a   :  { %340 = vmatpush.bf16.msra.mxu2 %v1229_v54  ;;  %366 = vmatpush.bf16.msra.mxu0 %v1234_v55  ;;  %v1455_v31 = vld [vmem:[%s1620_s3 + $0x18] sm:$0xff]  ;;  %v1467_v34 = vld [vmem:[%s1620_s3 + $0x10] sm:$0xff]  ;;  %v1473_v36 = vld [vmem:[%s1620_s3 + $0x40] sm:$0xff] }
  0x1b   :  { %352 = vmatpush.bf16.msra.mxu3 %v1319_v25  ;;  %v1486_v39 = vld [vmem:[%s1620_s3] sm:$0xff]  ;;  %v1495_v40 = vld [vmem:[%s1622_s4 + $0x38] sm:$0xff] }
  0x1c   :  { %378 = vmatpush.bf16.msra.mxu1 %v826_v29 }
  0x1e   :  { %341 = vmatpush.bf16.msra.mxu2 %v1247_v59  ;;  %367 = vmatpush.bf16.msra.mxu0 %v1260_v0 }
  0x1f   :  { %353 = vmatpush.bf16.msra.mxu3 %v1334_v35 }
  0x20   :  { %379 = vmatpush.bf16.msra.mxu1 %v818_v37 }
  0x22   :  { %342 = vmatpush.bf16.msra.mxu2 %v1283_v9  ;;  %368 = vmatpush.bf16.msra.mxu0 %v1296_v16 }
  0x23   :  { %354 = vmatpush.bf16.msra.mxu3 %v1349_v45 }
  0x24   :  { %380 = vmatpush.bf16.msra.mxu1 %v810_v47 }
  0x26   :  { %490 = vmatpush.bf16.msrb.mxu2 %v1379_v60  ;;  %569 = vmatpush.bf16.msrb.mxu0 %v1495_v40 }
  0x27   :  { %355 = vmatpush.bf16.msra.mxu3 %v1364_v53 }
  0x28   :  { %381 = vmatpush.bf16.msra.mxu1 %v802_v57 }
  0x2b   :  { %503 = vmatpush.bf16.msrb.mxu3 %v1374_v58 }
  0x2c   :  { %596 = vmatpush.bf16.msrb.mxu1 %v1076_v3  ;;  %v1390_v3 = vld [vmem:[%s1620_s3 + $0x70] sm:$0xff] }
  0x2f   :  { %504 = vmatpush.bf16.msrb.mxu3 %v1390_v3 }
  0x84   :  { %v149_v1 = vpop.f32.mrf.mxu1 }
  0x85   :  { %v150_v2 = vadd.f32 %v149_v1, %v122_v62 }
  0x87   :  { %v166_v5 = vmax.f32 %v150_v2, 0.0 }
  0x89   :  { %v168_v6 = vpack.c.bf16 %v166_v5, %v166_v5 }
  0x8b   :  { %343 = vmatmul.bf16.vlgmr.msra.gmra.mxu2 %v168_v6  ;;  %369 = vmatmul.bf16.vlgmr.msra.gmra.mxu0 %v168_v6 }
  0x8c   :  { %v151_v8 = vpop.f32.mrf.mxu1 }
  0x94   :  { %v162_v12 = vpop.f32.mrf.mxu1 }
  0x95   :  { %v163_v13 = vadd.f32 %v162_v12, %v123_v10 }
  0x97   :  { %v167_v17 = vmax.f32 %v163_v13, 0.0 }
  0x99   :  { %v169_v20 = vpack.c.bf16 %v167_v17, %v167_v17 }
  0x9b   :  { %356 = vmatmul.bf16.vlgmr.msra.gmra.mxu3 %v169_v20  ;;  %382 = vmatmul.bf16.vlgmr.msra.gmra.mxu1 %v169_v20 }
  0x9c   :  { %v164_v22 = vpop.f32.mrf.mxu1  ;;  %609 = vmatpush.bf16.msra.mxu1 %v1086_v7  ;;  %v1413_v7 = vld [vmem:[%s1620_s3 + $0x68] sm:$0xff] }
  0x9d   :  { %505 = vmatpush.bf16.msrb.mxu3 %v1413_v7 }
  0xab   :  { %955 = vmatmul.msk.bf16.vlgmr.msrb.gmra.mxu1 %vm136_vm0, %v585_v24 }
  0xac   :  { %658 = vmatpush.bf16.msrb.mxu1 %v1164_v33  ;;  %v1419_v33 = vld [vmem:[%s1620_s3 + $0x30] sm:$0xff] }
  0xad   :  { %491 = vmatpush.bf16.msrb.mxu2 %v1419_v33 }
  0xb0   :  { %659 = vmatpush.bf16.msrb.mxu1 %v1191_v42  ;;  %v1424_v42 = vld [vmem:[%s1620_s3 + $0x60] sm:$0xff] }
  0xb1   :  { %506 = vmatpush.bf16.msrb.mxu3 %v1424_v42 }
  0xb4   :  { %660 = vmatpush.bf16.msrb.mxu1 %v1269_v4  ;;  %v1431_v4 = vld [vmem:[%s1620_s3 + $0x28] sm:$0xff] }
  0xb5   :  { %492 = vmatpush.bf16.msrb.mxu2 %v1431_v4 }
  0xb8   :  { %661 = vmatpush.bf16.msrb.mxu1 %v1305_v21  ;;  %v1437_v21 = vld [vmem:[%s1620_s3 + $0x58] sm:$0xff] }
  0xb9   :  { %507 = vmatpush.bf16.msrb.mxu3 %v1437_v21  ;;  %493 = vmatpush.bf16.msrb.mxu2 %v1443_v28 }
  0xbb   :  { %956 = vmatmul.msk.bf16.vlgmr.msra.gmra.mxu1 %vm136_vm0, %v585_v24 }
  0xbc   :  { %662 = vmatpush.bf16.msrb.mxu1 %v826_v29  ;;  %v1448_v29 = vld [vmem:[%s1620_s3 + $0x50] sm:$0xff] }
  0xbd   :  { %508 = vmatpush.bf16.msrb.mxu3 %v1448_v29  ;;  %494 = vmatpush.bf16.msrb.mxu2 %v1455_v31 }
  0xc0   :  { %663 = vmatpush.bf16.msrb.mxu1 %v818_v37  ;;  %v1479_v37 = vld [vmem:[%s1620_s3 + $0x8] sm:$0xff] }
  0xc1   :  { %509 = vmatpush.bf16.msrb.mxu3 %v1461_v32  ;;  %495 = vmatpush.bf16.msrb.mxu2 %v1467_v34 }
  0xc4   :  { %664 = vmatpush.bf16.msrb.mxu1 %v810_v47 }
  0xc5   :  { %510 = vmatpush.bf16.msrb.mxu3 %v1473_v36  ;;  %496 = vmatpush.bf16.msrb.mxu2 %v1479_v37 }
  0xc8   :  { %665 = vmatpush.bf16.msrb.mxu1 %v802_v57 }
  0xc9   :  { %632 = vmatpush.bf16.msra.mxu3 %v1147_v27  ;;  %497 = vmatpush.bf16.msrb.mxu2 %v1486_v39 }
  0xcd   :  { %633 = vmatpush.bf16.msra.mxu3 %v1180_v38  ;;  %619 = vmatpush.bf16.msra.mxu2 %v1098_v11  ;;  %v1502_v38 = vld [vmem:[%s1622_s4 + $0x30] sm:$0xff]  ;;  %v1510_v11 = vld [vmem:[%s1622_s4 + $0x28] sm:$0xff] }
  0xce   :  { %570 = vmatpush.bf16.msrb.mxu0 %v1502_v38 }
  0xd1   :  { %634 = vmatpush.bf16.msra.mxu3 %v1258_v63  ;;  %620 = vmatpush.bf16.msra.mxu2 %v1119_v18  ;;  %v1517_v63 = vld [vmem:[%s1623_s6] sm:$0x3] }
  0xd2   :  { %571 = vmatpush.bf16.msrb.mxu0 %v1510_v11  ;;  %v171_v47 = vperm.slane %v1517_v63, 0 }
  0xd5   :  { %635 = vmatpush.bf16.msra.mxu3 %v1294_v14  ;;  %621 = vmatpush.bf16.msra.mxu2 %v1145_v26  ;;  %v1523_v26 = vld [vmem:[%s1622_s4 + $0x20] sm:$0xff] }
  0xd6   :  { %572 = vmatpush.bf16.msrb.mxu0 %v1523_v26 }
  0xd9   :  { %636 = vmatpush.bf16.msra.mxu3 %v1319_v25  ;;  %622 = vmatpush.bf16.msra.mxu2 %v1189_v41  ;;  %v172_v25 = vperm.slane %v1517_v63, 1  ;;  %v1532_v41 = vld [vmem:[%s1622_s4 + $0x18] sm:$0xff] }
  0xda   :  { %573 = vmatpush.bf16.msrb.mxu0 %v1532_v41 }
  0xdd   :  { %637 = vmatpush.bf16.msra.mxu3 %v1334_v35  ;;  %623 = vmatpush.bf16.msra.mxu2 %v1211_v48  ;;  %v1542_v48 = vld [vmem:[%s1622_s4 + $0x10] sm:$0xff] }
  0xde   :  { %574 = vmatpush.bf16.msrb.mxu0 %v1542_v48 }
  0xe1   :  { %638 = vmatpush.bf16.msra.mxu3 %v1349_v45  ;;  %624 = vmatpush.bf16.msra.mxu2 %v1229_v54  ;;  %v1551_v54 = vld [vmem:[%s1622_s4 + $0x8] sm:$0xff] }
  0xe2   :  { %575 = vmatpush.bf16.msrb.mxu0 %v1551_v54 }
  0xe5   :  { %639 = vmatpush.bf16.msra.mxu3 %v1364_v53  ;;  %625 = vmatpush.bf16.msra.mxu2 %v1247_v59  ;;  %v1560_v59 = vld [vmem:[%s1622_s4] sm:$0xff] }
  0xe6   :  { %576 = vmatpush.bf16.msrb.mxu0 %v1560_v59 }
  0xe9   :  { %626 = vmatpush.bf16.msra.mxu2 %v1283_v9 }
  0xea   :  { %645 = vmatpush.bf16.msra.mxu0 %v1110_v15 }
  0xee   :  { %646 = vmatpush.bf16.msra.mxu0 %v1124_v19 }
  0xf2   :  { %647 = vmatpush.bf16.msra.mxu0 %v1156_v30 }
  0xf6   :  { %648 = vmatpush.bf16.msra.mxu0 %v1194_v43 }
  0xfa   :  { %649 = vmatpush.bf16.msra.mxu0 %v1214_v49 }
  0xfe   :  { %650 = vmatpush.bf16.msra.mxu0 %v1234_v55  ;;  %v1015_v55 = vld [vmem:[%s1624_s7] ss:$0 sm:$0xff] }
 0x102   :  { %651 = vmatpush.bf16.msra.mxu0 %v1260_v0 }
 0x106   :  { %652 = vmatpush.bf16.msra.mxu0 %v1296_v16 }
 0x108   :  { %v370_v27 = vpop.f32.mrf.mxu0 }
 0x109   :  { %v371_v46 = vadd.f32 %v370_v27, %v172_v25 }
 0x10e   :  { %v344_v18 = vpop.f32.mrf.mxu2 }
 0x10f   :  { %v345_v51 = vadd.f32 %v344_v18, %v171_v47 }
 0x110   :  { %v372_v14 = vpop.f32.mrf.mxu0 }
 0x116   :  { %v346_v44 = vpop.f32.mrf.mxu2 }
 0x118   :  { %v383_v35 = vpop.f32.mrf.mxu1 }
 0x119   :  { %v384_v50 = vadd.f32 %v383_v35, %v371_v46 }
 0x11b   :  { %v388_v45 = vmax.f32 %v384_v50, 0.0 }
 0x11d   :  { %v390_v52 = vpack.c.bf16 %v388_v45, %v388_v45 }
 0x11e   :  { %v357_v56 = vpop.f32.mrf.mxu3 }
 0x11f   :  { %v358_v57 = vadd.f32 %v357_v56, %v345_v51  ;;  %511 = vmatmul.bf16.vlgmr.msrb.gmra.mxu3 %v390_v52 }
 0x120   :  { %v385_v53 = vpop.f32.mrf.mxu1  ;;  %688 = vmatpush.bf16.msrb.mxu3 %v1374_v58 }
 0x121   :  { %v387_v1 = vmax.f32 %v358_v57, 0.0 }
 0x123   :  { %v389_v2 = vpack.c.bf16 %v387_v1, %v387_v1 }
 0x124   :  { %689 = vmatpush.bf16.msrb.mxu3 %v1390_v3 }
 0x125   :  { %498 = vmatmul.bf16.vlgmr.msrb.gmra.mxu2 %v389_v2 }
 0x126   :  { %v359_v9 = vpop.f32.mrf.mxu3  ;;  %675 = vmatpush.bf16.msrb.mxu2 %v1379_v60 }
 0x128   :  { %v598_v5 = vpop.f32.mrf.mxu1  ;;  %690 = vmatpush.bf16.msrb.mxu3 %v1413_v7 }
 0x129   :  { %v599_v6 = vadd.f32 %v598_v5, %v122_v62 }
 0x12a   :  { %676 = vmatpush.bf16.msrb.mxu2 %v1419_v33 }
 0x12b   :  { %v615_v58 = vmax.f32 %v599_v6, 0.0 }
 0x12c   :  { %691 = vmatpush.bf16.msrb.mxu3 %v1424_v42 }
 0x12d   :  { %v617_v60 = vpack.c.bf16 %v615_v58, %v615_v58 }
 0x12e   :  { %677 = vmatpush.bf16.msrb.mxu2 %v1431_v4 }
 0x130   :  { %v600_v15 = vpop.f32.mrf.mxu1  ;;  %692 = vmatpush.bf16.msrb.mxu3 %v1437_v21 }
 0x132   :  { %678 = vmatpush.bf16.msrb.mxu2 %v1443_v28  ;;  %v1016_v28 = vld [vmem:[%s1625_s8] ss:$0 sm:$0xff] }
 0x134   :  { %693 = vmatpush.bf16.msrb.mxu3 %v1448_v29 }
 0x135   :  { %627 = vmatmul.bf16.vlgmr.msra.gmra.mxu2 %v617_v60 }
 0x136   :  { %679 = vmatpush.bf16.msrb.mxu2 %v1455_v31 }
 0x138   :  { %v611_v19 = vpop.f32.mrf.mxu1  ;;  %694 = vmatpush.bf16.msrb.mxu3 %v1461_v32 }
 0x139   :  { %v612_v30 = vadd.f32 %v611_v19, %v123_v10 }
 0x13a   :  { %680 = vmatpush.bf16.msrb.mxu2 %v1467_v34 }
 0x13b   :  { %v616_v43 = vmax.f32 %v612_v30, 0.0 }
 0x13c   :  { %695 = vmatpush.bf16.msrb.mxu3 %v1473_v36 }
 0x13d   :  { %v618_v3 = vpack.c.bf16 %v616_v43, %v616_v43 }
 0x13e   :  { %681 = vmatpush.bf16.msrb.mxu2 %v1479_v37 }
 0x13f   :  { %640 = vmatmul.bf16.vlgmr.msra.gmra.mxu3 %v618_v3  ;;  %666 = vmatmul.bf16.vlgmr.msrb.gmra.mxu1 %v618_v3 }
 0x140   :  { %v613_v49 = vpop.f32.mrf.mxu1 }
 0x142   :  { %682 = vmatpush.bf16.msrb.mxu2 %v1486_v39 }
 0x1a2   :  { %v512_v61 = vpop.f32.mrf.mxu3 }
 0x1a8   :  { %v499_v62 = vpop.f32.mrf.mxu2 }
 0x1a9   :  { %v500_v8 = vadd.f32 %v1015_v55, %v499_v62 }
 0x1aa   :  { %v514_v10 = vpop.f32.mrf.mxu3 }
 0x1ab   :  { %v513_v12 = vadd.f32 %v512_v61, %v500_v8 }
 0x1ad   :  { %v516_v13 = vmax.f32 %v513_v12, 0.0 }
 0x1af   :  { %v517_v0 = vpack.c.bf16 %v516_v13, %v516_v13 }
 0x1b0   :  { %v501_v17 = vpop.f32.mrf.mxu2 }
 0x1b1   :  { %577 = vmatmul.bf16.vlgmr.msrb.gmra.mxu0 %v517_v0 }
 0x1b2   :  { %703 = vmatpush.bf16.msrb.mxu0 %v1495_v40 }
 0x1b6   :  { %704 = vmatpush.bf16.msrb.mxu0 %v1502_v38 }
 0x1b8   :  { %v628_v16 = vpop.f32.mrf.mxu2 }
 0x1b9   :  { %v629_v20 = vadd.f32 %v628_v16, %v171_v47 }
 0x1ba   :  { %705 = vmatpush.bf16.msrb.mxu0 %v1510_v11 }
 0x1bc   :  { %v667_v4 = vpop.f32.mrf.mxu1 }
 0x1be   :  { %706 = vmatpush.bf16.msrb.mxu0 %v1523_v26 }
 0x1c0   :  { %v630_v22 = vpop.f32.mrf.mxu2 }
 0x1c1   :  { %653 = vmatmul.bf16.vlgmr.msra.gmra.mxu0 %v617_v60 }
 0x1c2   :  { %v641_v23 = vpop.f32.mrf.mxu3  ;;  %707 = vmatpush.bf16.msrb.mxu0 %v1532_v41 }
 0x1c3   :  { %v642_v24 = vadd.f32 %v641_v23, %v629_v20 }
 0x1c4   :  { %v669_v21 = vpop.f32.mrf.mxu1 }
 0x1c5   :  { %v671_v7 = vmax.f32 %v642_v24, 0.0 }
 0x1c6   :  { %708 = vmatpush.bf16.msrb.mxu0 %v1542_v48 }
 0x1c7   :  { %v673_v33 = vpack.c.bf16 %v671_v7, %v671_v7 }
 0x1c9   :  { %683 = vmatmul.bf16.vlgmr.msrb.gmra.mxu2 %v673_v33 }
 0x1ca   :  { %v643_v42 = vpop.f32.mrf.mxu3  ;;  %709 = vmatpush.bf16.msrb.mxu0 %v1551_v54 }
 0x1ce   :  { %710 = vmatpush.bf16.msrb.mxu0 %v1560_v59 }
 0x22e   :  { %v578_v29 = vpop.f32.mrf.mxu0 }
 0x22f   :  { %v579_v31 = vadd.f32 %v1016_v28, %v578_v29 }
 0x231   :  { %583 = vst.msk [vmem:[%s1626_s9] sm:$0xff] %vm582_vm1, %v579_v31 }
 0x236   :  { %v580_v32 = vpop.f32.mrf.mxu0 }
 0x23e   :  { %v654_v34 = vpop.f32.mrf.mxu0 }
 0x23f   :  { %v655_v36 = vadd.f32 %v654_v34, %v172_v25 }
 0x241   :  { %v668_v37 = vadd.f32 %v667_v4, %v655_v36 }
 0x243   :  { %v672_v39 = vmax.f32 %v668_v37, 0.0 }
 0x245   :  { %v674_v40 = vpack.c.bf16 %v672_v39, %v672_v39 }
 0x246   :  { %v656_v27 = vpop.f32.mrf.mxu0 }
 0x247   :  { %696 = vmatmul.bf16.vlgmr.msrb.gmra.mxu3 %v674_v40 }
 0x24c   :  { %v684_v38 = vpop.f32.mrf.mxu2 }
 0x24d   :  { %v685_v18 = vadd.f32 %v1015_v55, %v684_v38 }
 0x254   :  { %v686_v11 = vpop.f32.mrf.mxu2 }
 0x2ca   :  { %v697_v14 = vpop.f32.mrf.mxu3 }
 0x2cb   :  { %v698_v26 = vadd.f32 %v697_v14, %v685_v18 }
 0x2cd   :  { %v701_v41 = vmax.f32 %v698_v26, 0.0 }
 0x2cf   :  { %v702_v44 = vpack.c.bf16 %v701_v41, %v701_v41 }
 0x2d1   :  { %711 = vmatmul.bf16.vlgmr.msrb.gmra.mxu0 %v702_v44 }
 0x2d2   :  { %v699_v46 = vpop.f32.mrf.mxu3 }
 0x34e   :  { %v712_v35 = vpop.f32.mrf.mxu0 }
 0x34f   :  { %v713_v48 = vadd.f32 %v1016_v28, %v712_v35 }
 0x351   :  { %716 = vst.msk [vmem:[%s1626_s9 + $0x8] sm:$0xff] %vm582_vm1, %v713_v48 }
 0x356   :  { %v714_v63 = vpop.f32.mrf.mxu0 }

</bundles_post_ra>
